<compile_context>
chip_gen: v6e
topology: v6e:2x2x1
jax: 0.10.0
libtpu: 0.0.40
codegen_flags: <defaults>
</compile_context>

<pallas_src>
import jax
import jax.numpy as jnp
from jax.experimental import pallas as pl
from jax.experimental.pallas import tpu as pltpu

IN_DIM = 28 * 28   # 784
HID_DIM = 512
OUT_DIM = 10
OUT_PAD = 128      # lane-dense padded output width
DROP_P = 0.2


def _round_up(x, m):
    return (x + m - 1) // m * m


def _dropout_keep(rows, cols, seed):
    """Deterministic per-element keep mask via a splitmix32-style hash.

    Uses only plain jnp integer ops (iota/mul/xor/shift/compare) so it lowers
    identically on TPU Mosaic and in interpret mode.
    """
    idx = (rows * HID_DIM + cols).astype(jnp.uint32)
    z = idx + seed.astype(jnp.uint32) * jnp.uint32(0x9E3779B9)
    z = (z ^ (z >> jnp.uint32(16))) * jnp.uint32(0x85EBCA6B)
    z = (z ^ (z >> jnp.uint32(13))) * jnp.uint32(0xC2B2AE35)
    z = z ^ (z >> jnp.uint32(16))
    hi24 = (z >> jnp.uint32(8)).astype(jnp.int32)          # uniform in [0, 2^24)
    return hi24 >= jnp.int32(int(DROP_P * (1 << 24)))      # P(keep) = 1 - p


def _mlp_kernel(seed_ref, x_ref, w0_ref, b0_ref, w1_ref, b1_ref, o_ref):
    # ---- Linear 0 (bf16 MXU, f32 accumulate) + bias + ReLU ----
    h = jnp.dot(x_ref[...], w0_ref[...], preferred_element_type=jnp.float32)
    h = jnp.maximum(h + b0_ref[...], jnp.float32(0.0))           # [TB, 512] f32

    # ---- Dropout(p=0.2), train-mode semantics, per-tile-independent mask ----
    row0 = pl.program_id(0) * h.shape[0]
    rows = jax.lax.broadcasted_iota(jnp.int32, h.shape, 0) + row0
    cols = jax.lax.broadcasted_iota(jnp.int32, h.shape, 1)
    keep = _dropout_keep(rows, cols, seed_ref[0])
    h = jnp.where(keep, h * jnp.float32(1.0 / (1.0 - DROP_P)), jnp.float32(0.0))

    # ---- Linear 1 (padded to 128 lanes) + Sigmoid ----
    logits = jnp.dot(h.astype(jnp.bfloat16), w1_ref[...],
                     preferred_element_type=jnp.float32)
    logits = logits + b1_ref[...]                                 # [TB, 128]
    p = jax.nn.sigmoid(logits)

    # ---- torch.round(x, decimals=4) (round-half-to-even, like jnp.round) ----
    o_ref[...] = jnp.round(p * jnp.float32(1e4)) * jnp.float32(1e-4)


@jax.jit
def digit_classifier_forward(images, w0, b0, w1, b1, seed):
    B = images.shape[0]
    assert images.shape[1] == IN_DIM

    TB = min(256, _round_up(max(B, 1), 8))      # batch tile (multiple of 8)
    B_pad = _round_up(B, TB)

    # One-time wrapper-side conversions / padding (not inside the kernel).
    x = jnp.pad(images, ((0, B_pad - B), (0, 0))).astype(jnp.bfloat16)
    w0b = w0.astype(jnp.bfloat16)                                 # [784, 512]
    w1p = jnp.pad(w1, ((0, 0), (0, OUT_PAD - OUT_DIM))).astype(jnp.bfloat16)
    b1p = jnp.pad(b1, ((0, 0), (0, OUT_PAD - OUT_DIM)))           # [1, 128] f32

    out = pl.pallas_call(
        _mlp_kernel,
        out_shape=jax.ShapeDtypeStruct((B_pad, OUT_PAD), jnp.float32),
        grid_spec=pl.GridSpec(
            grid=(B_pad // TB,),
            in_specs=[
                pl.BlockSpec(memory_space=pltpu.MemorySpace.SMEM),   # seed
                pl.BlockSpec((TB, IN_DIM), lambda i: (i, 0)),        # x tile
                pl.BlockSpec((IN_DIM, HID_DIM), lambda i: (0, 0)),   # W0 (resident)
                pl.BlockSpec((1, HID_DIM), lambda i: (0, 0)),        # b0 (resident)
                pl.BlockSpec((HID_DIM, OUT_PAD), lambda i: (0, 0)),  # W1 (resident)
                pl.BlockSpec((1, OUT_PAD), lambda i: (0, 0)),        # b1 (resident)
            ],
            out_specs=pl.BlockSpec((TB, OUT_PAD), lambda i: (i, 0)),
        ),
        compiler_params=pltpu.CompilerParams(
            dimension_semantics=("parallel",),
        ),
    )(seed, x, w0b, b0, w1p, b1p)

    return out[:B, :OUT_DIM]


def reference_forward(images, w0, b0, w1, b1, seed):
    """Pure-JAX reference with identical bf16 casts and dropout mask."""
    B = images.shape[0]
    h = jnp.dot(images.astype(jnp.bfloat16), w0.astype(jnp.bfloat16),
                preferred_element_type=jnp.float32) + b0
    h = jnp.maximum(h, 0.0)
    rows = jax.lax.broadcasted_iota(jnp.int32, (B, HID_DIM), 0)
    cols = jax.lax.broadcasted_iota(jnp.int32, (B, HID_DIM), 1)
    keep = _dropout_keep(rows, cols, seed[0])
    h = jnp.where(keep, h * (1.0 / (1.0 - DROP_P)), 0.0)
    logits = jnp.dot(h.astype(jnp.bfloat16), w1.astype(jnp.bfloat16),
                     preferred_element_type=jnp.float32) + b1
    p = jax.nn.sigmoid(logits)
    return jnp.round(p * 1e4) * 1e-4


def init_params(key):
    """Deterministic params with PyTorch-Linear-style uniform init."""
    k0, k1, k2, k3 = jax.random.split(key, 4)
    bound0 = 1.0 / (IN_DIM ** 0.5)
    bound1 = 1.0 / (HID_DIM ** 0.5)
    # stored as [in, out] so the kernel computes x @ W
    w0 = jax.random.uniform(k0, (IN_DIM, HID_DIM), jnp.float32, -bound0, bound0)
    b0 = jax.random.uniform(k1, (1, HID_DIM), jnp.float32, -bound0, bound0)
    w1 = jax.random.uniform(k2, (HID_DIM, OUT_DIM), jnp.float32, -bound1, bound1)
    b1 = jax.random.uniform(k3, (1, OUT_DIM), jnp.float32, -bound1, bound1)
    return w0, b0, w1, b1


if __name__ == "__main__":
    key = jax.random.PRNGKey(0)
    pkey, xkey = jax.random.split(key)

    w0, b0, w1, b1 = init_params(pkey)

    B = 8
    images = jax.random.uniform(xkey, (B, IN_DIM), jnp.float32)   # fake MNIST batch
    seed = jnp.array([0], dtype=jnp.int32)                        # deterministic dropout seed

    out = digit_classifier_forward(images, w0, b0, w1, b1, seed)
    out = jax.block_until_ready(out)

    assert out.shape == (B, OUT_DIM), out.shape
    assert out.dtype == jnp.float32
    # sigmoid + round-to-4-decimals output must lie in [0, 1]
    assert bool(jnp.all(out >= 0.0)) and bool(jnp.all(out <= 1.0))

    # correctness vs pure-JAX reference (same bf16 casts, same dropout mask)
    ref = reference_forward(images, w0, b0, w1, b1, seed)
    assert bool(jnp.max(jnp.abs(out - ref)) < 5e-3), float(jnp.max(jnp.abs(out - ref)))

    print("KERNEL_OK")
</pallas_src>

<mosaic_0001>
module attributes {stable_mosaic.version = 11 : i64} {
  func.func @_mlp_kernel(%arg0: i32, %arg1: memref<1xi32, #tpu.memory_space<smem>>, %arg2: memref<8x784xbf16, #tpu.memory_space<vmem>>, %arg3: memref<784x512xbf16, #tpu.memory_space<vmem>>, %arg4: memref<1x512xf32, #tpu.memory_space<vmem>>, %arg5: memref<512x128xbf16, #tpu.memory_space<vmem>>, %arg6: memref<1x128xf32, #tpu.memory_space<vmem>>, %arg7: memref<8x128xf32, #tpu.memory_space<vmem>>) attributes {dimension_semantics = [#tpu.dimension_semantics<parallel>], iteration_bounds = array<i64: 1>, scalar_prefetch = 0 : i64, scratch_operands = 0 : i64, tpu.core_type = #tpu.core_type<tc>, window_params = [{transform_indices = @transform_0, window_bounds = array<i64: 1>}, {transform_indices = @transform_1, window_bounds = array<i64: 8, 784>}, {pipeline_mode = #tpu.pipeline_mode<synchronous>, transform_indices = @transform_2, window_bounds = array<i64: 784, 512>}, {pipeline_mode = #tpu.pipeline_mode<synchronous>, transform_indices = @transform_3, window_bounds = array<i64: 1, 512>}, {pipeline_mode = #tpu.pipeline_mode<synchronous>, transform_indices = @transform_4, window_bounds = array<i64: 512, 128>}, {pipeline_mode = #tpu.pipeline_mode<synchronous>, transform_indices = @transform_5, window_bounds = array<i64: 1, 128>}, {transform_indices = @transform_6, window_bounds = array<i64: 8, 128>}]} {
    %c0 = arith.constant 0 : index
    %c0_0 = arith.constant 0 : index
    %0 = vector.load %arg2[%c0, %c0_0] : memref<8x784xbf16, #tpu.memory_space<vmem>>, vector<8x784xbf16>
    %c0_1 = arith.constant 0 : index
    %c0_2 = arith.constant 0 : index
    %1 = vector.load %arg3[%c0_1, %c0_2] : memref<784x512xbf16, #tpu.memory_space<vmem>>, vector<784x512xbf16>
    %cst = arith.constant dense<0.000000e+00> : vector<8x512xf32>
    %2 = tpu.matmul %0, %1, %cst {dimension_numbers = #tpu.dot_dimension_numbers<[1], [0], [0], [1], [0, 0, 1, 1], [], []>} : vector<8x784xbf16>, vector<784x512xbf16>, vector<8x512xf32> -> vector<8x512xf32>
    %c0_3 = arith.constant 0 : index
    %c0_4 = arith.constant 0 : index
    %3 = vector.load %arg4[%c0_3, %c0_4] : memref<1x512xf32, #tpu.memory_space<vmem>>, vector<1x512xf32>
    %4 = vector.broadcast %3 : vector<1x512xf32> to vector<8x512xf32>
    %5 = arith.addf %2, %4 : vector<8x512xf32>
    %cst_5 = arith.constant 0.000000e+00 : f32
    %6 = vector.broadcast %cst_5 : f32 to vector<8x512xf32>
    %7 = arith.maximumf %5, %6 : vector<8x512xf32>
    %c8_i32 = arith.constant 8 : i32
    %8 = arith.muli %arg0, %c8_i32 : i32
    %9 = tpu.iota {dimensions = array<i32: 0>} : vector<8x512xi32>
    %10 = vector.broadcast %8 : i32 to vector<8x512xi32>
    %11 = arith.addi %9, %10 : vector<8x512xi32>
    %12 = tpu.iota {dimensions = array<i32: 1>} : vector<8x512xi32>
    %c0_6 = arith.constant 0 : index
    %13 = memref.load %arg1[%c0_6] : memref<1xi32, #tpu.memory_space<smem>>
    %c512_i32 = arith.constant 512 : i32
    %14 = vector.broadcast %c512_i32 : i32 to vector<8x512xi32>
    %15 = arith.muli %11, %14 : vector<8x512xi32>
    %16 = arith.addi %15, %12 : vector<8x512xi32>
    %c-1640531527_i32 = arith.constant -1640531527 : i32
    %17 = arith.muli %13, %c-1640531527_i32 : i32
    %18 = vector.broadcast %17 : i32 to vector<8x512xi32>
    %19 = arith.addi %16, %18 : vector<8x512xi32>
    %c16_i32 = arith.constant 16 : i32
    %20 = vector.broadcast %c16_i32 : i32 to vector<8x512xi32>
    %21 = arith.shrui %19, %20 : vector<8x512xi32>
    %22 = arith.xori %19, %21 : vector<8x512xi32>
    %c-2048144789_i32 = arith.constant -2048144789 : i32
    %23 = vector.broadcast %c-2048144789_i32 : i32 to vector<8x512xi32>
    %24 = arith.muli %22, %23 : vector<8x512xi32>
    %c13_i32 = arith.constant 13 : i32
    %25 = vector.broadcast %c13_i32 : i32 to vector<8x512xi32>
    %26 = arith.shrui %24, %25 : vector<8x512xi32>
    %27 = arith.xori %24, %26 : vector<8x512xi32>
    %c-1028477387_i32 = arith.constant -1028477387 : i32
    %28 = vector.broadcast %c-1028477387_i32 : i32 to vector<8x512xi32>
    %29 = arith.muli %27, %28 : vector<8x512xi32>
    %c16_i32_7 = arith.constant 16 : i32
    %30 = vector.broadcast %c16_i32_7 : i32 to vector<8x512xi32>
    %31 = arith.shrui %29, %30 : vector<8x512xi32>
    %32 = arith.xori %29, %31 : vector<8x512xi32>
    %c8_i32_8 = arith.constant 8 : i32
    %33 = vector.broadcast %c8_i32_8 : i32 to vector<8x512xi32>
    %34 = arith.shrui %32, %33 : vector<8x512xi32>
    %c3355443_i32 = arith.constant 3355443 : i32
    %35 = vector.broadcast %c3355443_i32 : i32 to vector<8x512xi32>
    %36 = arith.cmpi sge, %34, %35 : vector<8x512xi32>
    %cst_9 = arith.constant 1.250000e+00 : f32
    %37 = vector.broadcast %cst_9 : f32 to vector<8x512xf32>
    %38 = arith.mulf %7, %37 : vector<8x512xf32>
    %cst_10 = arith.constant 0.000000e+00 : f32
    %39 = vector.broadcast %cst_10 : f32 to vector<8x512xf32>
    %40 = arith.select %36, %38, %39 : vector<8x512xi1>, vector<8x512xf32>
    %41 = arith.truncf %40 : vector<8x512xf32> to vector<8x512xbf16>
    %c0_11 = arith.constant 0 : index
    %c0_12 = arith.constant 0 : index
    %42 = vector.load %arg5[%c0_11, %c0_12] : memref<512x128xbf16, #tpu.memory_space<vmem>>, vector<512x128xbf16>
    %cst_13 = arith.constant dense<0.000000e+00> : vector<8x128xf32>
    %43 = tpu.matmul %41, %42, %cst_13 {dimension_numbers = #tpu.dot_dimension_numbers<[1], [0], [0], [1], [0, 0, 1, 1], [], []>} : vector<8x512xbf16>, vector<512x128xbf16>, vector<8x128xf32> -> vector<8x128xf32>
    %c0_14 = arith.constant 0 : index
    %c0_15 = arith.constant 0 : index
    %44 = vector.load %arg6[%c0_14, %c0_15] : memref<1x128xf32, #tpu.memory_space<vmem>>, vector<1x128xf32>
    %45 = vector.broadcast %44 : vector<1x128xf32> to vector<8x128xf32>
    %46 = arith.addf %43, %45 : vector<8x128xf32>
    %47 = arith.negf %46 : vector<8x128xf32>
    %48 = math.exp %47 : vector<8x128xf32>
    %cst_16 = arith.constant 1.000000e+00 : f32
    %49 = vector.broadcast %cst_16 : f32 to vector<8x128xf32>
    %50 = arith.addf %49, %48 : vector<8x128xf32>
    %51 = arith.divf %49, %50 : vector<8x128xf32>
    %cst_17 = arith.constant 1.000000e+04 : f32
    %52 = vector.broadcast %cst_17 : f32 to vector<8x128xf32>
    %53 = arith.mulf %51, %52 : vector<8x128xf32>
    %54 = math.roundeven %53 : vector<8x128xf32>
    %cst_18 = arith.constant 9.99999974E-5 : f32
    %55 = vector.broadcast %cst_18 : f32 to vector<8x128xf32>
    %56 = arith.mulf %54, %55 : vector<8x128xf32>
    %c0_19 = arith.constant 0 : index
    %c0_20 = arith.constant 0 : index
    %57 = vector.load %arg7[%c0_19, %c0_20] : memref<8x128xf32, #tpu.memory_space<vmem>>, vector<8x128xf32>
    tpu.vector_store %arg7[%c0_19, %c0_20], %56 {strides = array<i32>} : memref<8x128xf32, #tpu.memory_space<vmem>>, vector<8x128xf32>,
    return
  }
  func.func @transform_0(%arg0: i32) -> i32 {
    %c0_i32 = arith.constant 0 : i32
    %c0_i32_0 = arith.constant 0 : i32
    return %c0_i32 : i32
  }
  func.func @transform_1(%arg0: i32) -> (i32, i32) {
    %c0_i32 = arith.constant 0 : i32
    %c0_i32_0 = arith.constant 0 : i32
    return %arg0, %c0_i32 : i32, i32
  }
  func.func @transform_2(%arg0: i32) -> (i32, i32) {
    %c0_i32 = arith.constant 0 : i32
    %c0_i32_0 = arith.constant 0 : i32
    %c0_i32_1 = arith.constant 0 : i32
    return %c0_i32, %c0_i32_0 : i32, i32
  }
  func.func @transform_3(%arg0: i32) -> (i32, i32) {
    %c0_i32 = arith.constant 0 : i32
    %c0_i32_0 = arith.constant 0 : i32
    %c0_i32_1 = arith.constant 0 : i32
    return %c0_i32, %c0_i32_0 : i32, i32
  }
  func.func @transform_4(%arg0: i32) -> (i32, i32) {
    %c0_i32 = arith.constant 0 : i32
    %c0_i32_0 = arith.constant 0 : i32
    %c0_i32_1 = arith.constant 0 : i32
    return %c0_i32, %c0_i32_0 : i32, i32
  }
  func.func @transform_5(%arg0: i32) -> (i32, i32) {
    %c0_i32 = arith.constant 0 : i32
    %c0_i32_0 = arith.constant 0 : i32
    %c0_i32_1 = arith.constant 0 : i32
    return %c0_i32, %c0_i32_0 : i32, i32
  }
  func.func @transform_6(%arg0: i32) -> (i32, i32) {
    %c0_i32 = arith.constant 0 : i32
    %c0_i32_0 = arith.constant 0 : i32
    return %arg0, %c0_i32 : i32, i32
  }
}

</mosaic_0001>

<bundles_post_ra>
// kernel: digit_classifier_forward.1
= control target key start
LH: loop header
LB: loop body
LE: loop exit
PB: predicated region body
PF: predicated region fallthrough
CT: control target
= control target key end

     0   :  { %vm1252_vm0 = vcmask 130048   ;;  %s3495_s0 = inlined_call_operand.<no memory space> [shape: s32[1], index: 0, kind: input, shape index: {}]   ;;  %s3496_s1 = inlined_call_operand.vmem [shape: bf16[8,784], index: 1, kind: input, shape index: {}]   ;;  %s3497_s2 = inlined_call_operand.vmem [shape: bf16[784,512], index: 2, kind: input, shape index: {}]   ;;  %s3498_s3 = inlined_call_operand.vmem [shape: f32[1,512], index: 3, kind: input, shape index: {}]   ;;  %s3499_s4 = inlined_call_operand.vmem [shape: bf16[512,128], index: 4, kind: input, shape index: {}]   ;;  %s3500_s5 = inlined_call_operand.vmem [shape: f32[1,128], index: 5, kind: input, shape index: {}]   ;;  %s3501_s6 = inlined_call_operand.hbm [shape: f32[8,128], index: 6, kind: output, shape index: {}]  }
   0x1   :  { %v2334_v0 = vld [vmem:[%s3497_s2 + $0xe4] ss:$16 sps:$4 sm:$0xff]   ;;  %v2338_v2 = vld [vmem:[%s3497_s2 + $0xe0] ss:$16 sps:$4 sm:$0xff]   ;;  %v27_v48 = vld [vmem:[%s3496_s1 + $0x8] sm:$0xff] }
   0x2   :  { %v2336_v1 = vld [vmem:[%s3497_s2 + $0x2e4] ss:$16 sps:$4 sm:$0xff]   ;;  %1256 = vmatprep.subr.bf16.mxu0 %v2334_v0  ;;  %v2339_v3 = vld [vmem:[%s3497_s2 + $0x2e0] ss:$16 sps:$4 sm:$0xff]   ;;  %v2882_v51 = vcombine.high %v27_v48, %v27_v48 }
   0x3   :  { %1297 = vmatprep.subr.bf16.mxu1 %v2336_v1  ;;  %v2340_v4 = vld [vmem:[%s3497_s2 + $0xc4] ss:$16 sps:$4 sm:$0xff]   ;;  %1257 = vmatpush1.bf16.msra.mxu0 %v2338_v2  ;;  %v2344_v6 = vld [vmem:[%s3497_s2 + $0xc0] ss:$16 sps:$4 sm:$0xff]  }
   0x4   :  { %1298 = vmatpush1.bf16.msra.mxu1 %v2339_v3  ;;  %v2342_v5 = vld [vmem:[%s3497_s2 + $0x2c4] ss:$16 sps:$4 sm:$0xff]   ;;  %1258 = vmatprep.subr.bf16.mxu0 %v2340_v4  ;;  %v2345_v7 = vld [vmem:[%s3497_s2 + $0x2c0] ss:$16 sps:$4 sm:$0xff]  }
   0x5   :  { %1299 = vmatprep.subr.bf16.mxu1 %v2342_v5  ;;  %v2346_v8 = vld [vmem:[%s3497_s2 + $0xa4] ss:$16 sps:$4 sm:$0xff]   ;;  %v2350_v10 = vld [vmem:[%s3497_s2 + $0xa0] ss:$16 sps:$4 sm:$0xff]   ;;  %1329 = vmatprep.mubr.bf16.mxu1 %v2882_v51 }
   0x6   :  { %v2348_v9 = vld [vmem:[%s3497_s2 + $0x2a4] ss:$16 sps:$4 sm:$0xff]   ;;  %v2351_v11 = vld [vmem:[%s3497_s2 + $0x2a0] ss:$16 sps:$4 sm:$0xff]  }
   0x7   :  { %1259 = vmatpush1.bf16.msra.mxu0 %v2344_v6  ;;  %v2352_v12 = vld [vmem:[%s3497_s2 + $0x84] ss:$16 sps:$4 sm:$0xff]   ;;  %v2356_v14 = vld [vmem:[%s3497_s2 + $0x80] ss:$16 sps:$4 sm:$0xff]  }
   0x8   :  { %1300 = vmatpush1.bf16.msra.mxu1 %v2345_v7  ;;  %1260 = vmatprep.subr.bf16.mxu0 %v2346_v8  ;;  %v2354_v13 = vld [vmem:[%s3497_s2 + $0x284] ss:$16 sps:$4 sm:$0xff]   ;;  %v2357_v15 = vld [vmem:[%s3497_s2 + $0x280] ss:$16 sps:$4 sm:$0xff]   ;;  %v2942_v7 = vcombine.low %v27_v48, %v27_v48  ;;  %v2494_v48 = vld [vmem:[%s3497_s2 + $0x1ec] ss:$16 sps:$4 sm:$0xff]  }
   0x9   :  { %1301 = vmatprep.subr.bf16.mxu1 %v2348_v9  ;;  %v2358_v16 = vld [vmem:[%s3497_s2 + $0x64] ss:$16 sps:$4 sm:$0xff]   ;;  %v2362_v18 = vld [vmem:[%s3497_s2 + $0x60] ss:$16 sps:$4 sm:$0xff]  }
   0xa   :  { %v2360_v17 = vld [vmem:[%s3497_s2 + $0x264] ss:$16 sps:$4 sm:$0xff]   ;;  %v2363_v19 = vld [vmem:[%s3497_s2 + $0x260] ss:$16 sps:$4 sm:$0xff]  }
   0xb   :  { %1261 = vmatpush1.bf16.msra.mxu0 %v2350_v10  ;;  %v2364_v20 = vld [vmem:[%s3497_s2 + $0x44] ss:$16 sps:$4 sm:$0xff]   ;;  %v2368_v22 = vld [vmem:[%s3497_s2 + $0x40] ss:$16 sps:$4 sm:$0xff]  }
   0xc   :  { %1302 = vmatpush1.bf16.msra.mxu1 %v2351_v11  ;;  %1262 = vmatprep.subr.bf16.mxu0 %v2352_v12  ;;  %v2366_v21 = vld [vmem:[%s3497_s2 + $0x244] ss:$16 sps:$4 sm:$0xff]   ;;  %v2369_v23 = vld [vmem:[%s3497_s2 + $0x240] ss:$16 sps:$4 sm:$0xff]   ;;  %v2445_v11 = vld [vmem:[%s3497_s2 + $0xec] ss:$16 sps:$4 sm:$0xff]  }
   0xd   :  { %1303 = vmatprep.subr.bf16.mxu1 %v2354_v13  ;;  %v2370_v24 = vld [vmem:[%s3497_s2 + $0x24] ss:$16 sps:$4 sm:$0xff]   ;;  %v2374_v26 = vld [vmem:[%s3497_s2 + $0x20] ss:$16 sps:$4 sm:$0xff]   ;;  %v2693_v13 = vmov 0  }
   0xe   :  { %v2372_v25 = vld [vmem:[%s3497_s2 + $0x224] ss:$16 sps:$4 sm:$0xff]   ;;  %v2375_v27 = vld [vmem:[%s3497_s2 + $0x220] ss:$16 sps:$4 sm:$0xff]  }
   0xf   :  { %1263 = vmatpush1.bf16.msra.mxu0 %v2356_v14  ;;  %v2376_v28 = vld [vmem:[%s3497_s2 + $0x4] ss:$16 sps:$4 sm:$0xff]   ;;  %v2380_v30 = vld [vmem:[%s3497_s2] ss:$16 sps:$4 sm:$0xff]  }
  0x10   :  { %1304 = vmatpush1.bf16.msra.mxu1 %v2357_v15  ;;  %1264 = vmatprep.subr.bf16.mxu0 %v2358_v16  ;;  %v2378_v29 = vld [vmem:[%s3497_s2 + $0x204] ss:$16 sps:$4 sm:$0xff]   ;;  %v2381_v31 = vld [vmem:[%s3497_s2 + $0x200] ss:$16 sps:$4 sm:$0xff]   ;;  %v2443_v15 = vld [vmem:[%s3497_s2 + $0xe8] ss:$16 sps:$4 sm:$0xff]  }
  0x11   :  { %1305 = vmatprep.subr.bf16.mxu1 %v2360_v17  ;;  %v2382_v32 = vld [vmem:[%s3497_s2 + $0x1e4] ss:$16 sps:$4 sm:$0xff]   ;;  %v2386_v34 = vld [vmem:[%s3497_s2 + $0x1e0] ss:$16 sps:$4 sm:$0xff]   ;;  %v2974_v17 = vld [vmem:[%s3496_s1 + $0x18] ss:$0 sps:$4 sm:$0xff]  }
  0x12   :  { %v2384_v33 = vld [vmem:[%s3497_s2 + $0x3e4] ss:$16 sps:$4 sm:$0xff]   ;;  %v2387_v35 = vld [vmem:[%s3497_s2 + $0x3e0] ss:$16 sps:$4 sm:$0xff]  }
  0x13   :  { %1265 = vmatpush1.bf16.msra.mxu0 %v2362_v18  ;;  %v2388_v36 = vld [vmem:[%s3497_s2 + $0x1c4] ss:$16 sps:$4 sm:$0xff]   ;;  %v2392_v38 = vld [vmem:[%s3497_s2 + $0x1c0] ss:$16 sps:$4 sm:$0xff]   ;;  %v2452_v18 = vld [vmem:[%s3497_s2 + $0xcc] ss:$16 sps:$4 sm:$0xff]  }
  0x14   :  { %1306 = vmatpush1.bf16.msra.mxu1 %v2363_v19  ;;  %1266 = vmatprep.subr.bf16.mxu0 %v2364_v20  ;;  %v2390_v37 = vld [vmem:[%s3497_s2 + $0x3c4] ss:$16 sps:$4 sm:$0xff]   ;;  %v2393_v39 = vld [vmem:[%s3497_s2 + $0x3c0] ss:$16 sps:$4 sm:$0xff]   ;;  %v2450_v20 = vld [vmem:[%s3497_s2 + $0xc8] ss:$16 sps:$4 sm:$0xff]  }
  0x15   :  { %1307 = vmatprep.subr.bf16.mxu1 %v2366_v21  ;;  %v2394_v40 = vld [vmem:[%s3497_s2 + $0x1a4] ss:$16 sps:$4 sm:$0xff]   ;;  %v2398_v42 = vld [vmem:[%s3497_s2 + $0x1a0] ss:$16 sps:$4 sm:$0xff]  }
  0x16   :  { %v2396_v41 = vld [vmem:[%s3497_s2 + $0x3a4] ss:$16 sps:$4 sm:$0xff]   ;;  %v2399_v43 = vld [vmem:[%s3497_s2 + $0x3a0] ss:$16 sps:$4 sm:$0xff]  }
  0x17   :  { %1267 = vmatpush1.bf16.msra.mxu0 %v2368_v22  ;;  %v2400_v44 = vld [vmem:[%s3497_s2 + $0x184] ss:$16 sps:$4 sm:$0xff]   ;;  %v2404_v49 = vld [vmem:[%s3497_s2 + $0x180] ss:$16 sps:$4 sm:$0xff]   ;;  %v2458_v22 = vld [vmem:[%s3497_s2 + $0xac] ss:$16 sps:$4 sm:$0xff]  }
  0x18   :  { %1308 = vmatpush1.bf16.msra.mxu1 %v2369_v23  ;;  %1268 = vmatprep.subr.bf16.mxu0 %v2370_v24  ;;  %v2402_v45 = vld [vmem:[%s3497_s2 + $0x384] ss:$16 sps:$4 sm:$0xff]   ;;  %v2405_v50 = vld [vmem:[%s3497_s2 + $0x380] ss:$16 sps:$4 sm:$0xff]   ;;  %v2456_v24 = vld [vmem:[%s3497_s2 + $0xa8] ss:$16 sps:$4 sm:$0xff]  }
  0x19   :  { %1309 = vmatprep.subr.bf16.mxu1 %v2372_v25  ;;  %v26_v46 = vld [vmem:[%s3496_s1] sm:$0xff] }
  0x1a   :  { %v2871_v47 = vcombine.high %v26_v46, %v26_v46  ;;  %v2406_v52 = vld [vmem:[%s3497_s2 + $0x164] ss:$16 sps:$4 sm:$0xff]   ;;  %v2410_v54 = vld [vmem:[%s3497_s2 + $0x160] ss:$16 sps:$4 sm:$0xff]   ;;  %v2940_v6 = vcombine.low %v26_v46, %v26_v46  ;;  %v2486_v46 = vld [vmem:[%s3497_s2 + $0x8] ss:$16 sps:$4 sm:$0xff]  }
  0x1b   :  { %1269 = vmatpush1.bf16.msra.mxu0 %v2374_v26  ;;  %v2408_v53 = vld [vmem:[%s3497_s2 + $0x364] ss:$16 sps:$4 sm:$0xff]   ;;  %v2411_v55 = vld [vmem:[%s3497_s2 + $0x360] ss:$16 sps:$4 sm:$0xff]   ;;  %v2464_v26 = vld [vmem:[%s3497_s2 + $0x8c] ss:$16 sps:$4 sm:$0xff]  }
  0x1c   :  { %1310 = vmatpush1.bf16.msra.mxu1 %v2375_v27  ;;  %1270 = vmatprep.subr.bf16.mxu0 %v2376_v28  ;;  %v2412_v56 = vld [vmem:[%s3497_s2 + $0x144] ss:$16 sps:$4 sm:$0xff]   ;;  %v2416_v58 = vld [vmem:[%s3497_s2 + $0x140] ss:$16 sps:$4 sm:$0xff]   ;;  %v2462_v28 = vld [vmem:[%s3497_s2 + $0x88] ss:$16 sps:$4 sm:$0xff]  }
  0x1d   :  { %1311 = vmatprep.subr.bf16.mxu1 %v2378_v29  ;;  %1288 = vmatprep.mubr.bf16.mxu0 %v2871_v47  ;;  %v2414_v57 = vld [vmem:[%s3497_s2 + $0x344] ss:$16 sps:$4 sm:$0xff]   ;;  %v2417_v59 = vld [vmem:[%s3497_s2 + $0x340] ss:$16 sps:$4 sm:$0xff]  }
  0x1e   :  { %v2418_v60 = vld [vmem:[%s3497_s2 + $0x124] ss:$16 sps:$4 sm:$0xff]   ;;  %v2422_v62 = vld [vmem:[%s3497_s2 + $0x120] ss:$16 sps:$4 sm:$0xff]  }
  0x1f   :  { %1271 = vmatpush1.bf16.msra.mxu0 %v2380_v30  ;;  %v2420_v61 = vld [vmem:[%s3497_s2 + $0x324] ss:$16 sps:$4 sm:$0xff]   ;;  %v2423_v63 = vld [vmem:[%s3497_s2 + $0x320] ss:$16 sps:$4 sm:$0xff]   ;;  %v2470_v30 = vld [vmem:[%s3497_s2 + $0x6c] ss:$16 sps:$4 sm:$0xff]  }
  0x20   :  { %1312 = vmatpush1.bf16.msra.mxu1 %v2381_v31  ;;  %1272 = vmatprep.subr.bf16.mxu0 %v2382_v32  ;;  %v2424_v0 = vld [vmem:[%s3497_s2 + $0x104] ss:$16 sps:$4 sm:$0xff]   ;;  %v2428_v2 = vld [vmem:[%s3497_s2 + $0x100] ss:$16 sps:$4 sm:$0xff]  }
  0x21   :  { %1313 = vmatprep.subr.bf16.mxu1 %v2384_v33  ;;  %v2426_v1 = vld [vmem:[%s3497_s2 + $0x304] ss:$16 sps:$4 sm:$0xff]   ;;  %v2429_v3 = vld [vmem:[%s3497_s2 + $0x300] ss:$16 sps:$4 sm:$0xff]  }
  0x22   :  { %v2436_v4 = vld [vmem:[%s3497_s2 + $0x4e4] ss:$16 sps:$4 sm:$0xff]   ;;  %v2434_v8 = vld [vmem:[%s3497_s2 + $0x4e0] ss:$16 sps:$4 sm:$0xff]  }
  0x23   :  { %1273 = vmatpush2.bf16.msra.mxu0 %v2386_v34  ;;  %v2439_v5 = vld [vmem:[%s3497_s2 + $0x604] ss:$16 sps:$4 sm:$0xff]   ;;  %v2437_v9 = vld [vmem:[%s3497_s2 + $0x600] ss:$16 sps:$4 sm:$0xff]   ;;  %v2468_v34 = vld [vmem:[%s3497_s2 + $0x68] ss:$16 sps:$4 sm:$0xff]  }
  0x24   :  { %1314 = vmatpush2.bf16.msra.mxu1 %v2387_v35  ;;  %1274 = vmatprep.subr.bf16.mxu0 %v2388_v36  ;;  %v2442_v10 = vld [vmem:[%s3497_s2 + $0x4c4] ss:$16 sps:$4 sm:$0xff]   ;;  %v2440_v12 = vld [vmem:[%s3497_s2 + $0x4c0] ss:$16 sps:$4 sm:$0xff]   ;;  %v2476_v36 = vld [vmem:[%s3497_s2 + $0x4c] ss:$16 sps:$4 sm:$0xff]  }
  0x25   :  { %1315 = vmatprep.subr.bf16.mxu1 %v2390_v37  ;;  %v2448_v14 = vld [vmem:[%s3497_s2 + $0x4a4] ss:$16 sps:$4 sm:$0xff]   ;;  %v2446_v16 = vld [vmem:[%s3497_s2 + $0x4a0] ss:$16 sps:$4 sm:$0xff]  }
  0x26   :  { %v2455_v19 = vld [vmem:[%s3497_s2 + $0x484] ss:$16 sps:$4 sm:$0xff]   ;;  %v2453_v21 = vld [vmem:[%s3497_s2 + $0x480] ss:$16 sps:$4 sm:$0xff]  }
  0x27   :  { %1275 = vmatpush2.bf16.msra.mxu0 %v2392_v38  ;;  %v2461_v23 = vld [vmem:[%s3497_s2 + $0x464] ss:$16 sps:$4 sm:$0xff]   ;;  %v2459_v25 = vld [vmem:[%s3497_s2 + $0x460] ss:$16 sps:$4 sm:$0xff]   ;;  %v2474_v38 = vld [vmem:[%s3497_s2 + $0x48] ss:$16 sps:$4 sm:$0xff]  }
  0x28   :  { %1316 = vmatpush2.bf16.msra.mxu1 %v2393_v39  ;;  %1276 = vmatprep.subr.bf16.mxu0 %v2394_v40  ;;  %v2467_v27 = vld [vmem:[%s3497_s2 + $0x444] ss:$16 sps:$4 sm:$0xff]   ;;  %v2465_v29 = vld [vmem:[%s3497_s2 + $0x440] ss:$16 sps:$4 sm:$0xff]   ;;  %v2482_v40 = vld [vmem:[%s3497_s2 + $0x2c] ss:$16 sps:$4 sm:$0xff]  }
  0x29   :  { %1317 = vmatprep.subr.bf16.mxu1 %v2396_v41  ;;  %v2473_v31 = vld [vmem:[%s3497_s2 + $0x424] ss:$16 sps:$4 sm:$0xff]   ;;  %v2471_v35 = vld [vmem:[%s3497_s2 + $0x420] ss:$16 sps:$4 sm:$0xff]  }
  0x2a   :  { %v3024_v32 = vld [vmem:[%s3496_s1 + $0x10] sm:$0xff] }
  0x2b   :  { %1277 = vmatpush2.bf16.msra.mxu0 %v2398_v42  ;;  %v3028_v33 = vcombine.high %v3024_v32, %v3024_v32  ;;  %v2479_v37 = vld [vmem:[%s3497_s2 + $0x404] ss:$16 sps:$4 sm:$0xff]   ;;  %v2477_v39 = vld [vmem:[%s3497_s2 + $0x400] ss:$16 sps:$4 sm:$0xff]   ;;  %v2480_v42 = vld [vmem:[%s3497_s2 + $0x28] ss:$16 sps:$4 sm:$0xff]  }
  0x2c   :  { %1318 = vmatpush2.bf16.msra.mxu1 %v2399_v43  ;;  %1278 = vmatprep.subr.bf16.mxu0 %v2400_v44  ;;  %v2485_v41 = vld [vmem:[%s3497_s2 + $0x5e4] ss:$16 sps:$4 sm:$0xff]   ;;  %v2483_v43 = vld [vmem:[%s3497_s2 + $0x5e0] ss:$16 sps:$4 sm:$0xff]   ;;  %v2488_v44 = vld [vmem:[%s3497_s2 + $0xc] ss:$16 sps:$4 sm:$0xff]  }
  0x2d   :  { %1319 = vmatprep.subr.bf16.mxu1 %v2402_v45  ;;  %v2491_v45 = vld [vmem:[%s3497_s2 + $0x5c4] ss:$16 sps:$4 sm:$0xff]  }
  0x2f   :  { %1279 = vmatpush2.bf16.msra.mxu0 %v2404_v49  ;;  %v2497_v49 = vld [vmem:[%s3497_s2 + $0x5a4] ss:$16 sps:$4 sm:$0xff]  }
  0x30   :  { %1320 = vmatpush2.bf16.msra.mxu1 %v2405_v50  ;;  %1280 = vmatprep.subr.bf16.mxu0 %v2406_v52  ;;  %v2492_v50 = vld [vmem:[%s3497_s2 + $0x1e8] ss:$16 sps:$4 sm:$0xff]   ;;  %v2495_v52 = vld [vmem:[%s3497_s2 + $0x5a0] ss:$16 sps:$4 sm:$0xff]  }
  0x31   :  { %1321 = vmatprep.subr.bf16.mxu1 %v2408_v53  ;;  %v2500_v53 = vld [vmem:[%s3497_s2 + $0x1cc] ss:$16 sps:$4 sm:$0xff]  }
  0x33   :  { %1281 = vmatpush2.bf16.msra.mxu0 %v2410_v54  ;;  %v2503_v54 = vld [vmem:[%s3497_s2 + $0x584] ss:$16 sps:$4 sm:$0xff]  }
  0x34   :  { %1322 = vmatpush2.bf16.msra.mxu1 %v2411_v55  ;;  %1282 = vmatprep.subr.bf16.mxu0 %v2412_v56  ;;  %v2498_v55 = vld [vmem:[%s3497_s2 + $0x1c8] ss:$16 sps:$4 sm:$0xff]   ;;  %v2501_v56 = vld [vmem:[%s3497_s2 + $0x580] ss:$16 sps:$4 sm:$0xff]  }
  0x35   :  { %1323 = vmatprep.subr.bf16.mxu1 %v2414_v57  ;;  %v2506_v57 = vld [vmem:[%s3497_s2 + $0x1ac] ss:$16 sps:$4 sm:$0xff]  }
  0x37   :  { %1283 = vmatpush2.bf16.msra.mxu0 %v2416_v58  ;;  %v2509_v58 = vld [vmem:[%s3497_s2 + $0x564] ss:$16 sps:$4 sm:$0xff]  }
  0x38   :  { %1324 = vmatpush2.bf16.msra.mxu1 %v2417_v59  ;;  %1284 = vmatprep.subr.bf16.mxu0 %v2418_v60  ;;  %v2504_v59 = vld [vmem:[%s3497_s2 + $0x1a8] ss:$16 sps:$4 sm:$0xff]   ;;  %v2507_v60 = vld [vmem:[%s3497_s2 + $0x560] ss:$16 sps:$4 sm:$0xff]  }
  0x39   :  { %1325 = vmatprep.subr.bf16.mxu1 %v2420_v61  ;;  %v2512_v61 = vld [vmem:[%s3497_s2 + $0x18c] ss:$16 sps:$4 sm:$0xff]  }
  0x3b   :  { %1285 = vmatpush2.bf16.msra.mxu0 %v2422_v62  ;;  %v2515_v62 = vld [vmem:[%s3497_s2 + $0x544] ss:$16 sps:$4 sm:$0xff]  }
  0x3c   :  { %1326 = vmatpush2.bf16.msra.mxu1 %v2423_v63  ;;  %1286 = vmatprep.subr.bf16.mxu0 %v2424_v0  ;;  %v2510_v63 = vld [vmem:[%s3497_s2 + $0x188] ss:$16 sps:$4 sm:$0xff]   ;;  %v2513_v0 = vld [vmem:[%s3497_s2 + $0x540] ss:$16 sps:$4 sm:$0xff]  }
  0x3d   :  { %1327 = vmatprep.subr.bf16.mxu1 %v2426_v1  ;;  %v2518_v1 = vld [vmem:[%s3497_s2 + $0x16c] ss:$16 sps:$4 sm:$0xff]  }
  0x3f   :  { %1287 = vmatpush2.bf16.msra.mxu0 %v2428_v2  ;;  %v2521_v2 = vld [vmem:[%s3497_s2 + $0x524] ss:$16 sps:$4 sm:$0xff]  }
  0x40   :  { %1328 = vmatpush2.bf16.msra.mxu1 %v2429_v3  ;;  %1338 = vmatprep.subr.bf16.mxu0 %v2436_v4  ;;  %v2516_v3 = vld [vmem:[%s3497_s2 + $0x168] ss:$16 sps:$4 sm:$0xff]   ;;  %v2519_v4 = vld [vmem:[%s3497_s2 + $0x520] ss:$16 sps:$4 sm:$0xff]  }
  0x41   :  { %1393 = vmatprep.subr.bf16.mxu1 %v2439_v5  ;;  %v2524_v5 = vld [vmem:[%s3497_s2 + $0x14c] ss:$16 sps:$4 sm:$0xff]  }
  0x42   :  { %1289 = vmatmul.mubr.bf16.vlgmr.msra.gmra.mxu0 %v2940_v6 }
  0x43   :  { %1330 = vmatmul.mubr.bf16.vlgmr.msra.gmra.mxu1 %v2942_v7  ;;  %1339 = vmatpush1.bf16.msra.mxu0 %v2434_v8  ;;  %v2527_v8 = vld [vmem:[%s3497_s2 + $0x504] ss:$16 sps:$4 sm:$0xff]  }
  0x44   :  { %1394 = vmatpush1.bf16.msra.mxu1 %v2437_v9  ;;  %1340 = vmatprep.subr.bf16.mxu0 %v2442_v10  ;;  %v2522_v9 = vld [vmem:[%s3497_s2 + $0x148] ss:$16 sps:$4 sm:$0xff]   ;;  %v2525_v10 = vld [vmem:[%s3497_s2 + $0x500] ss:$16 sps:$4 sm:$0xff]  }
  0x45   :  { %1411 = vmatprep.mubr.bf16.mxu1 %v2693_v13  ;;  %1420 = vmatprep.subr.bf16.mxu1 %v2445_v11  ;;  %v2532_v11 = vld [vmem:[%s3497_s2 + $0x12c] ss:$16 sps:$4 sm:$0xff]  }
  0x46   :  { %1370 = vmatprep.mubr.bf16.mxu0 %v3028_v33 }
  0x47   :  { %1341 = vmatpush1.bf16.msra.mxu0 %v2440_v12  ;;  %v2535_v12 = vld [vmem:[%s3497_s2 + $0x2ec] ss:$16 sps:$4 sm:$0xff]  }
  0x48   :  { %1342 = vmatprep.subr.bf16.mxu0 %v2448_v14  ;;  %v3153_v14 = vcombine.low %v3024_v32, %v3024_v32  ;;  %v2562_v32 = vld [vmem:[%s3497_s2 + $0x48c] ss:$16 sps:$4 sm:$0xff]  }
  0x4b   :  { %2232 = vmatmul.mubr.msk.bf16.vlgmr.msra.gmra.mxu1 %vm1252_vm0, %v2974_v17  ;;  %1343 = vmatpush1.bf16.msra.mxu0 %v2446_v16  ;;  %v2533_v16 = vld [vmem:[%s3497_s2 + $0x2e8] ss:$16 sps:$4 sm:$0xff]  }
  0x4c   :  { %1421 = vmatpush1.bf16.msra.mxu1 %v2443_v15  ;;  %1344 = vmatprep.subr.bf16.mxu0 %v2455_v19  ;;  %v2530_v15 = vld [vmem:[%s3497_s2 + $0x128] ss:$16 sps:$4 sm:$0xff]   ;;  %v2541_v19 = vld [vmem:[%s3497_s2 + $0x2cc] ss:$16 sps:$4 sm:$0xff]  }
  0x4d   :  { %1422 = vmatprep.subr.bf16.mxu1 %v2452_v18  ;;  %1452 = vmatprep.mubr.bf16.mxu1 %v2871_v47  ;;  %v2489_v47 = vld [vmem:[%s3497_s2 + $0x5c0] ss:$16 sps:$4 sm:$0xff]   ;;  %v2538_v18 = vld [vmem:[%s3497_s2 + $0x10c] ss:$16 sps:$4 sm:$0xff]  }
  0x4f   :  { %1345 = vmatpush1.bf16.msra.mxu0 %v2453_v21  ;;  %v2539_v21 = vld [vmem:[%s3497_s2 + $0x2c8] ss:$16 sps:$4 sm:$0xff]  }
  0x50   :  { %1423 = vmatpush1.bf16.msra.mxu1 %v2450_v20  ;;  %1346 = vmatprep.subr.bf16.mxu0 %v2461_v23  ;;  %v2536_v20 = vld [vmem:[%s3497_s2 + $0x108] ss:$16 sps:$4 sm:$0xff]   ;;  %v2547_v23 = vld [vmem:[%s3497_s2 + $0x2ac] ss:$16 sps:$4 sm:$0xff]  }
  0x51   :  { %1424 = vmatprep.subr.bf16.mxu1 %v2458_v22  ;;  %v2544_v22 = vld [vmem:[%s3497_s2 + $0x4ec] ss:$16 sps:$4 sm:$0xff]  }
  0x53   :  { %1347 = vmatpush1.bf16.msra.mxu0 %v2459_v25  ;;  %v2545_v25 = vld [vmem:[%s3497_s2 + $0x2a8] ss:$16 sps:$4 sm:$0xff]  }
  0x54   :  { %1425 = vmatpush1.bf16.msra.mxu1 %v2456_v24  ;;  %1348 = vmatprep.subr.bf16.mxu0 %v2467_v27  ;;  %v2542_v24 = vld [vmem:[%s3497_s2 + $0x4e8] ss:$16 sps:$4 sm:$0xff]   ;;  %v2553_v27 = vld [vmem:[%s3497_s2 + $0x28c] ss:$16 sps:$4 sm:$0xff]  }
  0x55   :  { %1426 = vmatprep.subr.bf16.mxu1 %v2464_v26  ;;  %v2550_v26 = vld [vmem:[%s3497_s2 + $0x4cc] ss:$16 sps:$4 sm:$0xff]  }
  0x57   :  { %1349 = vmatpush1.bf16.msra.mxu0 %v2465_v29  ;;  %v2556_v29 = vld [vmem:[%s3497_s2 + $0x4ac] ss:$16 sps:$4 sm:$0xff]  }
  0x58   :  { %1427 = vmatpush1.bf16.msra.mxu1 %v2462_v28  ;;  %1350 = vmatprep.subr.bf16.mxu0 %v2473_v31  ;;  %v2548_v28 = vld [vmem:[%s3497_s2 + $0x4c8] ss:$16 sps:$4 sm:$0xff]  }
  0x59   :  { %1428 = vmatprep.subr.bf16.mxu1 %v2470_v30  ;;  %v2559_v30 = vld [vmem:[%s3497_s2 + $0x26c] ss:$16 sps:$4 sm:$0xff]   ;;  %v2554_v31 = vld [vmem:[%s3497_s2 + $0x4a8] ss:$16 sps:$4 sm:$0xff]  }
  0x5b   :  { %1351 = vmatpush1.bf16.msra.mxu0 %v2471_v35  ;;  %v2560_v35 = vld [vmem:[%s3497_s2 + $0x488] ss:$16 sps:$4 sm:$0xff]  }
  0x5c   :  { %1429 = vmatpush1.bf16.msra.mxu1 %v2468_v34  ;;  %1352 = vmatprep.subr.bf16.mxu0 %v2479_v37  ;;  %v2565_v34 = vld [vmem:[%s3497_s2 + $0x24c] ss:$16 sps:$4 sm:$0xff]  }
  0x5d   :  { %1430 = vmatprep.subr.bf16.mxu1 %v2476_v36  ;;  %v2568_v36 = vld [vmem:[%s3497_s2 + $0x46c] ss:$16 sps:$4 sm:$0xff]  }
  0x5e   :  { %v2571_v37 = vld [vmem:[%s3497_s2 + $0x22c] ss:$16 sps:$4 sm:$0xff]  }
  0x5f   :  { %1353 = vmatpush1.bf16.msra.mxu0 %v2477_v39  ;;  %v2569_v39 = vld [vmem:[%s3497_s2 + $0x228] ss:$16 sps:$4 sm:$0xff]  }
  0x60   :  { %1431 = vmatpush1.bf16.msra.mxu1 %v2474_v38  ;;  %1354 = vmatprep.subr.bf16.mxu0 %v2485_v41  ;;  %v2566_v38 = vld [vmem:[%s3497_s2 + $0x468] ss:$16 sps:$4 sm:$0xff]   ;;  %v2577_v41 = vld [vmem:[%s3497_s2 + $0x20c] ss:$16 sps:$4 sm:$0xff]  }
  0x61   :  { %1432 = vmatprep.subr.bf16.mxu1 %v2482_v40  ;;  %v2574_v40 = vld [vmem:[%s3497_s2 + $0x44c] ss:$16 sps:$4 sm:$0xff]  }
  0x63   :  { %1355 = vmatpush2.bf16.msra.mxu0 %v2483_v43  ;;  %v2575_v43 = vld [vmem:[%s3497_s2 + $0x208] ss:$16 sps:$4 sm:$0xff]  }
  0x64   :  { %1433 = vmatpush1.bf16.msra.mxu1 %v2480_v42  ;;  %1356 = vmatprep.subr.bf16.mxu0 %v2491_v45  ;;  %v2572_v42 = vld [vmem:[%s3497_s2 + $0x448] ss:$16 sps:$4 sm:$0xff]   ;;  %v2583_v45 = vld [vmem:[%s3497_s2 + $0x3ec] ss:$16 sps:$4 sm:$0xff]  }
  0x65   :  { %1434 = vmatprep.subr.bf16.mxu1 %v2488_v44  ;;  %v2580_v44 = vld [vmem:[%s3497_s2 + $0x42c] ss:$16 sps:$4 sm:$0xff]  }
  0x67   :  { %1357 = vmatpush2.bf16.msra.mxu0 %v2489_v47 }
  0x68   :  { %1435 = vmatpush1.bf16.msra.mxu1 %v2486_v46  ;;  %1358 = vmatprep.subr.bf16.mxu0 %v2497_v49 }
  0x69   :  { %1436 = vmatprep.subr.bf16.mxu1 %v2494_v48 }
  0x6b   :  { %1359 = vmatpush2.bf16.msra.mxu0 %v2495_v52 }
  0x6c   :  { %1437 = vmatpush2.bf16.msra.mxu1 %v2492_v50  ;;  %1360 = vmatprep.subr.bf16.mxu0 %v2503_v54 }
  0x6d   :  { %1438 = vmatprep.subr.bf16.mxu1 %v2500_v53 }
  0x6f   :  { %1361 = vmatpush2.bf16.msra.mxu0 %v2501_v56 }
  0x70   :  { %1439 = vmatpush2.bf16.msra.mxu1 %v2498_v55  ;;  %1362 = vmatprep.subr.bf16.mxu0 %v2509_v58 }
  0x71   :  { %1440 = vmatprep.subr.bf16.mxu1 %v2506_v57 }
  0x73   :  { %1363 = vmatpush2.bf16.msra.mxu0 %v2507_v60 }
  0x74   :  { %1441 = vmatpush2.bf16.msra.mxu1 %v2504_v59  ;;  %1364 = vmatprep.subr.bf16.mxu0 %v2515_v62 }
  0x75   :  { %1442 = vmatprep.subr.bf16.mxu1 %v2512_v61 }
  0x77   :  { %1365 = vmatpush2.bf16.msra.mxu0 %v2513_v0 }
  0x78   :  { %1443 = vmatpush2.bf16.msra.mxu1 %v2510_v63  ;;  %1366 = vmatprep.subr.bf16.mxu0 %v2521_v2 }
  0x79   :  { %1444 = vmatprep.subr.bf16.mxu1 %v2518_v1 }
  0x7b   :  { %1367 = vmatpush2.bf16.msra.mxu0 %v2519_v4 }
  0x7c   :  { %1445 = vmatpush2.bf16.msra.mxu1 %v2516_v3  ;;  %1368 = vmatprep.subr.bf16.mxu0 %v2527_v8 }
  0x7d   :  { %1446 = vmatprep.subr.bf16.mxu1 %v2524_v5 }
  0x7f   :  { %1369 = vmatpush2.bf16.msra.mxu0 %v2525_v10 }
  0x80   :  { %1447 = vmatpush2.bf16.msra.mxu1 %v2522_v9  ;;  %1461 = vmatprep.subr.bf16.mxu0 %v2535_v12 }
  0x81   :  { %1448 = vmatprep.subr.bf16.mxu1 %v2532_v11 }
  0x82   :  { %1371 = vmatmul.mubr.bf16.vlgmr.msra.gmra.mxu0 %v3153_v14 }
  0x83   :  { %1462 = vmatpush1.bf16.msra.mxu0 %v2533_v16  ;;  %1493 = vmatprep.mubr.bf16.mxu0 %v2882_v51  ;;  %v2551_v51 = vld [vmem:[%s3497_s2 + $0x288] ss:$16 sps:$4 sm:$0xff]  }
  0x84   :  { %1449 = vmatpush2.bf16.msra.mxu1 %v2530_v15  ;;  %1463 = vmatprep.subr.bf16.mxu0 %v2541_v19 }
  0x85   :  { %1450 = vmatprep.subr.bf16.mxu1 %v2538_v18 }
  0x87   :  { %1464 = vmatpush1.bf16.msra.mxu0 %v2539_v21 }
  0x88   :  { %1451 = vmatpush2.bf16.msra.mxu1 %v2536_v20  ;;  %1465 = vmatprep.subr.bf16.mxu0 %v2547_v23 }
  0x89   :  { %1502 = vmatprep.subr.bf16.mxu1 %v2544_v22 }
  0x8b   :  { %1453 = vmatmul.mubr.bf16.vlgmr.msra.gmra.mxu1 %v2940_v6  ;;  %1466 = vmatpush1.bf16.msra.mxu0 %v2545_v25  ;;  %v2557_v6 = vld [vmem:[%s3497_s2 + $0x268] ss:$16 sps:$4 sm:$0xff]  }
  0x8c   :  { %1503 = vmatpush1.bf16.msra.mxu1 %v2542_v24  ;;  %1467 = vmatprep.subr.bf16.mxu0 %v2553_v27 }
  0x8d   :  { %1504 = vmatprep.subr.bf16.mxu1 %v2550_v26  ;;  %1534 = vmatprep.mubr.bf16.mxu1 %v3028_v33  ;;  %v2563_v33 = vld [vmem:[%s3497_s2 + $0x248] ss:$16 sps:$4 sm:$0xff]  }
  0x8f   :  { %1468 = vmatpush1.bf16.msra.mxu0 %v2551_v51 }
  0x90   :  { %1505 = vmatpush1.bf16.msra.mxu1 %v2548_v28  ;;  %1469 = vmatprep.subr.bf16.mxu0 %v2559_v30 }
  0x91   :  { %1506 = vmatprep.subr.bf16.mxu1 %v2556_v29 }
  0x93   :  { %1470 = vmatpush1.bf16.msra.mxu0 %v2557_v6 }
  0x94   :  { %1507 = vmatpush1.bf16.msra.mxu1 %v2554_v31  ;;  %1471 = vmatprep.subr.bf16.mxu0 %v2565_v34 }
  0x95   :  { %1508 = vmatprep.subr.bf16.mxu1 %v2562_v32 }
  0x97   :  { %1472 = vmatpush1.bf16.msra.mxu0 %v2563_v33 }
  0x98   :  { %1509 = vmatpush1.bf16.msra.mxu1 %v2560_v35  ;;  %1473 = vmatprep.subr.bf16.mxu0 %v2571_v37 }
  0x99   :  { %1510 = vmatprep.subr.bf16.mxu1 %v2568_v36 }
  0x9b   :  { %1474 = vmatpush1.bf16.msra.mxu0 %v2569_v39 }
  0x9c   :  { %1511 = vmatpush1.bf16.msra.mxu1 %v2566_v38  ;;  %1475 = vmatprep.subr.bf16.mxu0 %v2577_v41 }
  0x9d   :  { %1512 = vmatprep.subr.bf16.mxu1 %v2574_v40 }
  0x9e   :  { %12 = vsyncpa [#allocation4], 0  ;;  %v2578_v46 = vld [vmem:[%s3497_s2 + $0x428] ss:$16 sps:$4 sm:$0xff]   ;;  %v2586_v48 = vld [vmem:[%s3497_s2 + $0x40c] ss:$16 sps:$4 sm:$0xff]  }
  0x9f   :  { %1476 = vmatpush1.bf16.msra.mxu0 %v2575_v43  ;;  %v2581_v47 = vld [vmem:[%s3497_s2 + $0x3e8] ss:$16 sps:$4 sm:$0xff]   ;;  %v2589_v49 = vld [vmem:[%s3497_s2 + $0x3cc] ss:$16 sps:$4 sm:$0xff]   ;;  %v2637_v26 = vld [vmem:[%s3499_s4 + $0x70] sm:$0xff]  }
  0xa0   :  { %1513 = vmatpush1.bf16.msra.mxu1 %v2572_v42  ;;  %1477 = vmatprep.subr.bf16.mxu0 %v2583_v45  ;;  %v2584_v50 = vld [vmem:[%s3497_s2 + $0x408] ss:$16 sps:$4 sm:$0xff]   ;;  %v2592_v53 = vld [vmem:[%s3497_s2 + $0x5ec] ss:$16 sps:$4 sm:$0xff]   ;;  %v2653_v51 = vld [vmem:[%s3499_s4 + $0xf0] sm:$0xff]  }
  0xa1   :  { %1514 = vmatprep.subr.bf16.mxu1 %v2580_v44  ;;  %v2587_v52 = vld [vmem:[%s3497_s2 + $0x3c8] ss:$16 sps:$4 sm:$0xff]   ;;  %v2595_v54 = vld [vmem:[%s3497_s2 + $0x3ac] ss:$16 sps:$4 sm:$0xff]   ;;  %v2642_v29 = vld [vmem:[%s3499_s4 + $0x20] sm:$0xff]  }
  0xa2   :  { %v2590_v55 = vld [vmem:[%s3497_s2 + $0x5e8] ss:$16 sps:$4 sm:$0xff]   ;;  %v2598_v57 = vld [vmem:[%s3497_s2 + $0x5cc] ss:$16 sps:$4 sm:$0xff]   ;;  %v2654_v30 = vld [vmem:[%s3499_s4 + $0xb0] sm:$0xff]  }
  0xa3   :  { %1478 = vmatpush2.bf16.msra.mxu0 %v2581_v47  ;;  %v2593_v56 = vld [vmem:[%s3497_s2 + $0x3a8] ss:$16 sps:$4 sm:$0xff]   ;;  %v2601_v58 = vld [vmem:[%s3497_s2 + $0x38c] ss:$16 sps:$4 sm:$0xff]   ;;  %v2645_v35 = vld [vmem:[%s3499_s4 + $0x50] sm:$0xff]  }
  0xa4   :  { %1515 = vmatpush1.bf16.msra.mxu1 %v2578_v46  ;;  %1479 = vmatprep.subr.bf16.mxu0 %v2589_v49  ;;  %v2596_v59 = vld [vmem:[%s3497_s2 + $0x5c8] ss:$16 sps:$4 sm:$0xff]   ;;  %v2604_v61 = vld [vmem:[%s3497_s2 + $0x5ac] ss:$16 sps:$4 sm:$0xff]   ;;  %v2646_v33 = vld [vmem:[%s3499_s4 + $0x10] sm:$0xff]  }
  0xa5   :  { %1516 = vmatprep.subr.bf16.mxu1 %v2586_v48  ;;  %v2599_v60 = vld [vmem:[%s3497_s2 + $0x388] ss:$16 sps:$4 sm:$0xff]   ;;  %v2607_v62 = vld [vmem:[%s3497_s2 + $0x36c] ss:$16 sps:$4 sm:$0xff]   ;;  %v2649_v38 = vld [vmem:[%s3499_s4 + $0x40] sm:$0xff]  }
  0xa6   :  { %v2602_v63 = vld [vmem:[%s3497_s2 + $0x5a8] ss:$16 sps:$4 sm:$0xff]   ;;  %v2610_v1 = vld [vmem:[%s3497_s2 + $0x58c] ss:$16 sps:$4 sm:$0xff]   ;;  %v2650_v39 = vld [vmem:[%s3499_s4] sm:$0xff]  }
  0xa7   :  { %1480 = vmatpush2.bf16.msra.mxu0 %v2587_v52  ;;  %v2605_v0 = vld [vmem:[%s3497_s2 + $0x368] ss:$16 sps:$4 sm:$0xff]   ;;  %v2613_v2 = vld [vmem:[%s3497_s2 + $0x34c] ss:$16 sps:$4 sm:$0xff]   ;;  %v2657_v42 = vld [vmem:[%s3499_s4 + $0xe0] sm:$0xff]  }
  0xa8   :  { %1517 = vmatpush1.bf16.msra.mxu1 %v2584_v50  ;;  %1481 = vmatprep.subr.bf16.mxu0 %v2595_v54  ;;  %v2608_v3 = vld [vmem:[%s3497_s2 + $0x588] ss:$16 sps:$4 sm:$0xff]   ;;  %v2616_v5 = vld [vmem:[%s3497_s2 + $0x56c] ss:$16 sps:$4 sm:$0xff]   ;;  %v2658_v43 = vld [vmem:[%s3499_s4 + $0xa0] sm:$0xff]  }
  0xa9   :  { %1518 = vmatprep.subr.bf16.mxu1 %v2592_v53  ;;  %v2611_v4 = vld [vmem:[%s3497_s2 + $0x348] ss:$16 sps:$4 sm:$0xff]   ;;  %v2619_v8 = vld [vmem:[%s3497_s2 + $0x32c] ss:$16 sps:$4 sm:$0xff]   ;;  %v2661_v54 = vld [vmem:[%s3499_s4 + $0xd0] sm:$0xff]  }
  0xaa   :  { %v2614_v9 = vld [vmem:[%s3497_s2 + $0x568] ss:$16 sps:$4 sm:$0xff]   ;;  %v2622_v11 = vld [vmem:[%s3497_s2 + $0x54c] ss:$16 sps:$4 sm:$0xff]   ;;  %s1604_s17 = smul.u32 2654435769, %s3495_s0 }
  0xab   :  { %1482 = vmatpush2.bf16.msra.mxu0 %v2593_v56  ;;  %v2617_v10 = vld [vmem:[%s3497_s2 + $0x328] ss:$16 sps:$4 sm:$0xff]   ;;  %v2625_v12 = vld [vmem:[%s3497_s2 + $0x30c] ss:$16 sps:$4 sm:$0xff]  }
  0xac   :  { %1519 = vmatpush2.bf16.msra.mxu1 %v2590_v55  ;;  %1483 = vmatprep.subr.bf16.mxu0 %v2601_v58  ;;  %v2620_v15 = vld [vmem:[%s3497_s2 + $0x548] ss:$16 sps:$4 sm:$0xff]   ;;  %v2628_v18 = vld [vmem:[%s3497_s2 + $0x52c] ss:$16 sps:$4 sm:$0xff]   ;;  %v2662_v55 = vld [vmem:[%s3499_s4 + $0x90] sm:$0xff]  }
  0xad   :  { %1520 = vmatprep.subr.bf16.mxu1 %v2598_v57  ;;  %v2623_v16 = vld [vmem:[%s3497_s2 + $0x308] ss:$16 sps:$4 sm:$0xff]   ;;  %v2631_v19 = vld [vmem:[%s3497_s2 + $0x60c] ss:$16 sps:$4 sm:$0xff]  }
  0xae   :  { %v2626_v20 = vld [vmem:[%s3497_s2 + $0x528] ss:$16 sps:$4 sm:$0xff]   ;;  %v2634_v22 = vld [vmem:[%s3497_s2 + $0x50c] ss:$16 sps:$4 sm:$0xff]  }
  0xaf   :  { %1484 = vmatpush2.bf16.msra.mxu0 %v2599_v60  ;;  %v2629_v21 = vld [vmem:[%s3497_s2 + $0x608] ss:$16 sps:$4 sm:$0xff]  }
  0xb0   :  { %1521 = vmatpush2.bf16.msra.mxu1 %v2596_v59  ;;  %1485 = vmatprep.subr.bf16.mxu0 %v2607_v62  ;;  %v2635_v23 = vld [vmem:[%s3499_s4 + $0x78] sm:$0xff]   ;;  %v2640_v27 = vld [vmem:[%s3499_s4 + $0x28] sm:$0xff]   ;;  %v228_v62 = vlaneseq }
  0xb1   :  { %1522 = vmatprep.subr.bf16.mxu1 %v2604_v61  ;;  %v2632_v24 = vld [vmem:[%s3497_s2 + $0x508] ss:$16 sps:$4 sm:$0xff]   ;;  %v2665_v61 = vld [vmem:[%s3499_s4 + $0xc0] sm:$0xff]  }
  0xb2   :  { %v2636_v25 = vld [vmem:[%s3499_s4 + $0x38] sm:$0xff]   ;;  %v2655_v6 = vld [vmem:[%s3499_s4 + $0xe8] sm:$0xff]  }
  0xb3   :  { %1486 = vmatpush2.bf16.msra.mxu0 %v2605_v0  ;;  %v2652_v28 = vld [vmem:[%s3499_s4 + $0xb8] sm:$0xff]   ;;  %v2656_v34 = vld [vmem:[%s3499_s4 + $0xa8] sm:$0xff]   ;;  %v1594_v0 = vand.u32 127, %v228_v62 }
  0xb4   :  { %1523 = vmatpush2.bf16.msra.mxu1 %v2602_v63  ;;  %1487 = vmatprep.subr.bf16.mxu0 %v2613_v2  ;;  %v2643_v31 = vld [vmem:[%s3499_s4 + $0x58] sm:$0xff]   ;;  %v2647_v36 = vld [vmem:[%s3499_s4 + $0x48] sm:$0xff]   ;;  %v2666_v63 = vld [vmem:[%s3499_s4 + $0x80] sm:$0xff]  }
  0xb5   :  { %1524 = vmatprep.subr.bf16.mxu1 %v2610_v1  ;;  %v2644_v32 = vld [vmem:[%s3499_s4 + $0x18] sm:$0xff]   ;;  %v2648_v37 = vld [vmem:[%s3499_s4 + $0x8] sm:$0xff]   ;;  %v3468_v1 = vshrl.u32 %v228_v62, 7  ;;  %v1595_v2 = vadd.s32 128, %v1594_v0 }
  0xb6   :  { %v2659_v48 = vld [vmem:[%s3499_s4 + $0xd8] sm:$0xff]   ;;  %v2663_v58 = vld [vmem:[%s3499_s4 + $0xc8] sm:$0xff]  }
  0xb7   :  { %1488 = vmatpush2.bf16.msra.mxu0 %v2611_v4  ;;  %v2660_v49 = vld [vmem:[%s3499_s4 + $0x98] sm:$0xff]   ;;  %v2664_v59 = vld [vmem:[%s3499_s4 + $0x88] sm:$0xff]  }
  0xb8   :  { %1525 = vmatpush2.bf16.msra.mxu1 %v2608_v3  ;;  %1489 = vmatprep.subr.bf16.mxu0 %v2619_v8  ;;  %v1599_v3 = vmul.u32 512, %v3468_v1 }
  0xb9   :  { %1526 = vmatprep.subr.bf16.mxu1 %v2616_v5  ;;  %v1605_v5 = vstv %s1604_s17 }
  0xba   :  { %v1601_v4 = vadd.s32 %v1599_v3, %v1595_v2  ;;  %v1600_v8 = vadd.s32 %v1599_v3, %v1594_v0 }
  0xbb   :  { %1490 = vmatpush2.bf16.msra.mxu0 %v2617_v10 }
  0xbc   :  { %1527 = vmatpush2.bf16.msra.mxu1 %v2614_v9  ;;  %1491 = vmatprep.subr.bf16.mxu0 %v2625_v12  ;;  %v1607_v9 = vadd.s32 %v1605_v5, %v1601_v4  ;;  %v1606_v10 = vadd.s32 %v1605_v5, %v1600_v8 }
  0xbd   :  { %1528 = vmatprep.subr.bf16.mxu1 %v2622_v11 }
  0xbe   :  { %v1611_v11 = vshrl.u32 %v1607_v9, 16  ;;  %v1610_v12 = vshrl.u32 %v1606_v10, 16 }
  0xbf   :  { %1492 = vmatpush2.bf16.msra.mxu0 %v2623_v16 }
  0xc0   :  { %1529 = vmatpush2.bf16.msra.mxu1 %v2620_v15  ;;  %1557 = vmatprep.subr.bf16.mxu0 %v2631_v19  ;;  %v1615_v15 = vxor.u32 %v1611_v11, %v1607_v9  ;;  %v1614_v16 = vxor.u32 %v1610_v12, %v1606_v10  ;;  %v238_v12 = vsub.s32 2, %v3468_v1 }
  0xc1   :  { %1530 = vmatprep.subr.bf16.mxu1 %v2628_v18 }
  0xc2   :  { %1494 = vmatmul.mubr.bf16.vlgmr.msra.gmra.mxu0 %v2942_v7  ;;  %v2638_v7 = vld [vmem:[%s3499_s4 + $0x30] sm:$0xff]   ;;  %v1619_v18 = vmul.u32 2246822507, %v1615_v15  ;;  %v1618_v19 = vmul.u32 2246822507, %v1614_v16  ;;  %v242_v15 = vsub.s32 3, %v3468_v1 }
  0xc3   :  { %1558 = vmatpush1.bf16.msra.mxu0 %v2629_v21  ;;  %1575 = vmatprep.mubr.bf16.mxu0 %v2693_v13  ;;  %v2639_v13 = vld [vmem:[%s3499_s4 + $0x68] sm:$0xff]  }
  0xc4   :  { %1531 = vmatpush2.bf16.msra.mxu1 %v2626_v20  ;;  %2280 = vmatprep.subr.bf16.mxu0 %v2635_v23  ;;  %v1623_v20 = vshrl.u32 %v1619_v18, 13  ;;  %v1622_v21 = vshrl.u32 %v1618_v19, 13 }
  0xc5   :  { %1532 = vmatprep.subr.bf16.mxu1 %v2634_v22  ;;  %v230_v22 = vsub.s32 0, %v3468_v1 }
  0xc6   :  { %v1627_v23 = vxor.u32 %v1623_v20, %v1619_v18 }
  0xc8   :  { %1533 = vmatpush2.bf16.msra.mxu1 %v2632_v24  ;;  %v3478_v24 = vld [vmem:[%s3498_s3] sm:$0xf] }
  0xca   :  { %2233 = vmatmul.mubr.msk.bf16.vlgmr.msra.gmra.mxu0 %vm1252_vm0, %v2974_v17  ;;  %v2641_v17 = vld [vmem:[%s3499_s4 + $0x60] sm:$0xff]  }
  0xcb   :  { %1535 = vmatmul.mubr.bf16.vlgmr.msra.gmra.mxu1 %v3153_v14  ;;  %2281 = vmatpush3.bf16.msra.mxu0 %v2636_v25  ;;  %v2651_v14 = vld [vmem:[%s3499_s4 + $0xf8] sm:$0xff]   ;;  %v1626_v25 = vxor.u32 %v1622_v21, %v1618_v19  ;;  %v243_v19 = vrot.slane %v3478_v24, %v242_v15 }
  0xcc   :  { %2282 = vmatprep.subr.bf16.mxu0 %v2637_v26  ;;  %2302 = vmatprep.subr.bf16.mxu1 %v2651_v14  ;;  %v234_v26 = vsub.s32 1, %v3468_v1 }
  0xcd   :  { %2303 = vmatpush3.bf16.msra.mxu1 %v2652_v28 }
  0xce   :  { %2304 = vmatprep.subr.bf16.mxu1 %v2653_v51 }
  0xcf   :  { %2283 = vmatpush3.bf16.msra.mxu0 %v2638_v7  ;;  %v231_v7 = vrot.slane %v3478_v24, %v230_v22 }
  0xd0   :  { %2284 = vmatprep.subr.bf16.mxu0 %v2639_v13  ;;  %v1631_v13 = vmul.u32 3266489909, %v1627_v23 }
  0xd1   :  { %2305 = vmatpush3.bf16.msra.mxu1 %v2654_v30 }
  0xd2   :  { %2306 = vmatprep.subr.bf16.mxu1 %v2655_v6  ;;  %v1635_v28 = vshrl.u32 %v1631_v13, 16 }
  0xd3   :  { %2285 = vmatpush3.bf16.msra.mxu0 %v2640_v27  ;;  %v1630_v27 = vmul.u32 3266489909, %v1626_v25 }
  0xd4   :  { %2286 = vmatprep.subr.bf16.mxu0 %v2641_v17  ;;  %v235_v17 = vrot.slane %v3478_v24, %v234_v26 }
  0xd5   :  { %2307 = vmatpush3.bf16.msra.mxu1 %v2656_v34  ;;  %v1634_v51 = vshrl.u32 %v1630_v27, 16 }
  0xd6   :  { %2308 = vmatprep.subr.bf16.mxu1 %v2657_v42 }
  0xd7   :  { %2287 = vmatpush3.bf16.msra.mxu0 %v2642_v29 }
  0xd8   :  { %2288 = vmatprep.subr.bf16.mxu0 %v2643_v31  ;;  %v1639_v31 = vxor.u32 %v1635_v28, %v1631_v13 }
  0xd9   :  { %2309 = vmatpush3.bf16.msra.mxu1 %v2658_v43 }
  0xda   :  { %2310 = vmatprep.subr.bf16.mxu1 %v2659_v48 }
  0xdb   :  { %2289 = vmatpush3.bf16.msra.mxu0 %v2644_v32  ;;  %v1638_v32 = vxor.u32 %v1634_v51, %v1630_v27 }
  0xdc   :  { %2290 = vmatprep.subr.bf16.mxu0 %v2645_v35 }
  0xdd   :  { %2311 = vmatpush3.bf16.msra.mxu1 %v2660_v49  ;;  %v1642_v42 = vshrl.u32 %v1638_v32, 8 }
  0xde   :  { %2312 = vmatprep.subr.bf16.mxu1 %v2661_v54  ;;  %v1597_v54 = vadd.s32 384, %v1594_v0 }
  0xdf   :  { %2291 = vmatpush3.bf16.msra.mxu0 %v2646_v33  ;;  %vm1646_vm2 = vcmp.ge.s32.totalorder %v1642_v42, 3355443 }
  0xe0   :  { %2292 = vmatprep.subr.bf16.mxu0 %v2647_v36  ;;  %vm2270_vm4 = vmpackc.low %vm1646_vm2, %vm1646_vm2 }
  0xe1   :  { %2313 = vmatpush3.bf16.msra.mxu1 %v2662_v55  ;;  %v1596_v55 = vadd.s32 256, %v1594_v0 }
  0xe2   :  { %2314 = vmatprep.subr.bf16.mxu1 %v2663_v58 }
  0xe3   :  { %2293 = vmatpush3.bf16.msra.mxu0 %v2648_v37 }
  0xe4   :  { %2294 = vmatprep.subr.bf16.mxu0 %v2649_v38  ;;  %v1643_v38 = vshrl.u32 %v1639_v31, 8 }
  0xe5   :  { %2315 = vmatpush3.bf16.msra.mxu1 %v2664_v59 }
  0xe6   :  { %2316 = vmatprep.subr.bf16.mxu1 %v2665_v61  ;;  %vm1647_vm1 = vcmp.ge.s32.totalorder %v1643_v38, 3355443 }
  0xe7   :  { %2295 = vmatpush3.bf16.msra.mxu0 %v2650_v39  ;;  %vm2267_vm3 = vmpackc.low %vm1647_vm1, %vm1647_vm1 }
  0xe9   :  { %2317 = vmatpush3.bf16.msra.mxu1 %v2666_v63 }
 0x102   :  { %v1290_v40 = vpop.f32.mrf.mxu0 }
 0x103   :  { %v3434_v41 = vpop.f32.mrf.mxu1  ;;  %v1291_v14 = vadd.f32 %v1290_v40, %v231_v7 }
 0x104   :  { %v1292_v44 = vpop.f32.mrf.mxu0 }
 0x105   :  { %v3442_v45 = vpop.f32.mrf.mxu1  ;;  %v1293_v29 = vadd.f32 %v1292_v44, %v235_v17  ;;  %v1332_v30 = vadd.f32 %v3434_v41, %v1291_v14 }
 0x106   :  { %v1294_v46 = vpop.f32.mrf.mxu0 }
 0x107   :  { %v1335_v47 = vpop.f32.mrf.mxu1  ;;  %v1334_v34 = vadd.f32 %v3442_v45, %v1293_v29 }
 0x108   :  { %v1295_v50 = vpop.f32.mrf.mxu0 }
 0x109   :  { %v1336_v52 = vpop.f32.mrf.mxu1 }
 0x10b   :  { %v1413_v53 = vpop.f32.mrf.mxu1 }
 0x10d   :  { %v1415_v56 = vpop.f32.mrf.mxu1 }
 0x10f   :  { %v1417_v57 = vpop.f32.mrf.mxu1 }
 0x110   :  { %v1603_v57 = vadd.s32 %v1599_v3, %v1597_v54 }
 0x111   :  { %v1418_v60 = vpop.f32.mrf.mxu1 }
 0x112   :  { %v1609_v58 = vadd.s32 %v1605_v5, %v1603_v57 }
 0x114   :  { %v1613_v60 = vshrl.u32 %v1609_v58, 16 }
 0x116   :  { %v1617_v62 = vxor.u32 %v1613_v60, %v1609_v58 }
 0x118   :  { %v1621_v2 = vmul.u32 2246822507, %v1617_v62 }
 0x11a   :  { %v1625_v8 = vshrl.u32 %v1621_v2, 13 }
 0x11c   :  { %v1629_v10 = vxor.u32 %v1625_v8, %v1621_v2 }
 0x11e   :  { %v1633_v16 = vmul.u32 3266489909, %v1629_v10 }
 0x120   :  { %v1637_v20 = vshrl.u32 %v1633_v16, 16 }
 0x122   :  { %v1641_v13 = vxor.u32 %v1637_v20, %v1633_v16 }
 0x142   :  { %v1372_v6 = vpop.f32.mrf.mxu0 }
 0x143   :  { %v1373_v35 = vadd.f32 %v1372_v6, %v1332_v30  ;;  %v1645_v6 = vshrl.u32 %v1641_v13, 8 }
 0x144   :  { %v1374_v33 = vpop.f32.mrf.mxu0 }
 0x145   :  { %v1414_v36 = vadd.f32 %v1413_v53, %v1373_v35  ;;  %v1375_v37 = vadd.f32 %v1374_v33, %v1334_v34  ;;  %vm1649_vm5 = vcmp.ge.s32.totalorder %v1645_v6, 3355443 }
 0x146   :  { %v1376_v39 = vpop.f32.mrf.mxu0  ;;  %vm2273_vm7 = vmpackc.low %vm1649_vm5, %vm1649_vm5 }
 0x147   :  { %v1584_v43 = vmax.f32 %v1414_v36, 0.0  ;;  %v1416_v46 = vadd.f32 %v1415_v56, %v1375_v37  ;;  %v1602_v56 = vadd.s32 %v1599_v3, %v1596_v55  ;;  %v239_v3 = vrot.slane %v3478_v24, %v238_v12 }
 0x148   :  { %v1377_v40 = vpop.f32.mrf.mxu0 }
 0x149   :  { %v1585_v47 = vmax.f32 %v1416_v46, 0.0  ;;  %v1650_v44 = vmul.f32 1.25, %v1584_v43  ;;  %v1608_v59 = vadd.s32 %v1605_v5, %v1602_v56 }
 0x14b   :  { %v1454_v48 = vpop.f32.mrf.mxu1  ;;  %v1651_v41 = vmul.f32 1.25, %v1585_v47  ;;  %v2271_v45 = vpack.c.bf16 %v1650_v44, %v1650_v44  ;;  %v1612_v61 = vshrl.u32 %v1608_v59, 16 }
 0x14c   :  { %v1455_v23 = vadd.f32 %v1454_v48, %v239_v3 }
 0x14d   :  { %v1456_v49 = vpop.f32.mrf.mxu1  ;;  %v2268_v50 = vpack.c.bf16 %v1651_v41, %v1651_v41  ;;  %v1616_v63 = vxor.u32 %v1612_v61, %v1608_v59 }
 0x14e   :  { %v1457_v26 = vadd.f32 %v1456_v49, %v243_v19  ;;  %v2234_v49 = vld [vmem:[%s3500_s5] ss:$0 sm:$0xff]  ;;  %s2694_s5 = smov [#allocation3]  }
 0x14f   :  { %v1458_v52 = vpop.f32.mrf.mxu1  ;;  %2269 = vmatprep.mubr.msk.bf16.mxu0 %vm2267_vm3, %v2268_v50  ;;  %v1620_v4 = vmul.u32 2246822507, %v1616_v63  ;;  %s2021_s1 = sshll.u32 %s2694_s5, 4  ;;  %s2022_s1 = int_to_ptr.vmem [resolvable:$true] %s2021_s1 }
 0x150   :  { %2272 = vmatmul.mubr.msk.bf16.vlgmr.msra.gmra.mxu0 %vm2270_vm4, %v2271_v45  ;;  %s2671_s19 = scalar_lea.vmem %s2022_s1, 128  ;;  %p2676_p1 = scmp.lt.s32.totalorder %s2022_s1, %s2022_s1 }
 0x151   :  { %v1459_v53 = vpop.f32.mrf.mxu1  ;;  %v1624_v9 = vshrl.u32 %v1620_v4, 13  ;;  %p2672_p0 = scmp.ne.s32.totalorder %s2022_s1, %s2671_s19  ;;  %p2677_p2 = scmp.lt.s32.totalorder %s2671_s19, %s2671_s19 }
 0x153   :  { %v1628_v11 = vxor.u32 %v1624_v9, %v1620_v4  ;;  %p2678_p3 = por %p2677_p2, %p2676_p1 }
 0x155   :  { %v1632_v18 = vmul.u32 3266489909, %v1628_v11  ;;  %p2679_p4 = pnand %p2678_p3, %p2672_p0 }
 0x157   :  { %v1636_v22 = vshrl.u32 %v1632_v18, 16 }
 0x159   :  { %v1640_v14 = vxor.u32 %v1636_v22, %v1632_v18 }
 0x15b   :  { %v1644_v34 = vshrl.u32 %v1640_v14, 8 }
 0x15d   :  { %vm1648_vm6 = vcmp.ge.s32.totalorder %v1644_v34, 3355443 }
 0x15e   :  { %vm2276_vm8 = vmpackc.low %vm1648_vm6, %vm1648_vm6 }
 0x182   :  { %v1495_v0 = vpop.f32.mrf.mxu0 }
 0x183   :  { %v1496_v7 = vadd.f32 %v1495_v0, %v1455_v23 }
 0x184   :  { %v1497_v5 = vpop.f32.mrf.mxu0 }
 0x185   :  { %v1498_v1 = vadd.f32 %v1497_v5, %v1457_v26 }
 0x186   :  { %v1499_v21 = vpop.f32.mrf.mxu0 }
 0x188   :  { %v1500_v25 = vpop.f32.mrf.mxu0 }
 0x18a   :  { %v1577_v17 = vpop.f32.mrf.mxu0 }
 0x18b   :  { %v1536_v27 = vpop.f32.mrf.mxu1 }
 0x18c   :  { %v1537_v28 = vadd.f32 %v1536_v27, %v1496_v7  ;;  %v1579_v29 = vpop.f32.mrf.mxu0 }
 0x18d   :  { %v1538_v51 = vpop.f32.mrf.mxu1 }
 0x18e   :  { %v1578_v30 = vadd.f32 %v1577_v17, %v1537_v28  ;;  %v1539_v31 = vadd.f32 %v1538_v51, %v1498_v1  ;;  %v1581_v24 = vpop.f32.mrf.mxu0 }
 0x18f   :  { %v1540_v32 = vpop.f32.mrf.mxu1 }
 0x190   :  { %v1586_v35 = vmax.f32 %v1578_v30, 0.0  ;;  %v1580_v33 = vadd.f32 %v1579_v29, %v1539_v31  ;;  %v1582_v37 = vpop.f32.mrf.mxu0 }
 0x191   :  { %v1541_v36 = vpop.f32.mrf.mxu1 }
 0x192   :  { %v1587_v38 = vmax.f32 %v1580_v33, 0.0  ;;  %v1652_v39 = vmul.f32 1.25, %v1586_v35 }
 0x194   :  { %v1653_v42 = vmul.f32 1.25, %v1587_v38  ;;  %v2277_v46 = vpack.c.bf16 %v1652_v39, %v1652_v39 }
 0x196   :  { %v2274_v43 = vpack.c.bf16 %v1653_v42, %v1653_v42 }
 0x198   :  { %2275 = vmatprep.mubr.msk.bf16.mxu1 %vm2273_vm7, %v2274_v43 }
 0x199   :  { %2278 = vmatmul.mubr.msk.bf16.vlgmr.msra.gmra.mxu1 %vm2276_vm8, %v2277_v46 }
 0x210   :  { %v2296_v40 = vpop.f32.mrf.mxu0 }
 0x212   :  { %v2297_v47 = vpop.f32.mrf.mxu0 }
 0x213   :  { %v2298_v44 = vadd.f32 %v2297_v47, %v2296_v40 }
 0x214   :  { %v2299_v48 = vpop.f32.mrf.mxu0 }
 0x215   :  { %v1960_v52 = vadd.f32 %v2298_v44, %v2234_v49 }
 0x216   :  { %v2300_v41 = vpop.f32.mrf.mxu0 }
 0x259   :  { %v2318_v50 = vpop.f32.mrf.mxu1 }
 0x25b   :  { %v2319_v45 = vpop.f32.mrf.mxu1 }
 0x25c   :  { %v2320_v53 = vadd.f32 %v2319_v45, %v2318_v50 }
 0x25d   :  { %v2321_v54 = vpop.f32.mrf.mxu1 }
 0x25e   :  { %v2000_v55 = vadd.f32 %v2320_v53, %v1960_v52 }
 0x25f   :  { %v2322_v57 = vpop.f32.mrf.mxu1 }
 0x260   :  { %v2279_v56 = vmul.f32 -1.442695, %v2000_v55 }
 0x262   :  { %2667 = vpow2.f32 %v2279_v56 }
 0x26f   :  { %v2668_v58 = vpop.eup %2667 }
 0x270   :  { %v2008_v59 = vadd.f32 1.0, %v2668_v58 }
 0x272   :  { %2669 = vrcp.f32 %v2008_v59 }
 0x27f   :  { %v2670_v60 = vpop.eup %2669 }
 0x280   :  { %v2011_v61 = vmul.f32 10000.0, %v2670_v60 }
 0x282   :  { %v2326_v62 = vcvt.f32.s32 %v2011_v61  ;;  %v2324_v2 = vand.u32 2147483647, %v2011_v61  ;;  %v2329_v8 = vand.u32 2147483648, %v2011_v61 }
 0x284   :  { %v2327_v63 = vcvt.s32.f32 %v2326_v62  ;;  %vm2325_vm9 = vcmp.lt.f32.partialorder %v2324_v2, 8388608.0 }
 0x286   :  { %v2328_v4 = vand.u32 2147483647, %v2327_v63 }
 0x288   :  { %v2330_v9 = vor.u32 %v2329_v8, %v2328_v4 }
 0x28a   :  { %v2331_v10 = vsel %vm2325_vm9, %v2330_v9, %v2011_v61 }
 0x28b   :  { %v2013_v11 = vmul.f32 0.0001, %v2331_v10 }
 0x28d   :  { %2014 = vst [vmem:[#allocation3] sm:$0xff] %v2013_v11 }
 0x28e   :  { %2682 = shalt.err (!%p2679_p4)
}
 0x28f   :  { %2024 = dma.vmem_to_hbm [thread:$0]  %s2022_s1, 128, %s3501_s6, [#allocation4]  }
 0x290   :  { %2691 = dma.done.wait [#allocation4], 128  }
 0x291   :  { %2692 = vsyncadd [#allocation4], 4294967168 }
 0x292   :  { %2028 = vsyncpa [#allocation4], 1 }

</bundles_post_ra>
